<compile_context>
chip_gen: v7x
topology: tpu7x:2x2x1
jax: 0.10.0
libtpu: 0.0.40
codegen_flags: <defaults>
</compile_context>

<pallas_src>
import functools

import jax
import jax.numpy as jnp
from jax.experimental import pallas as pl
from jax.experimental.pallas import tpu as pltpu


# --------------------------------- kernel ----------------------------------

def _infonce_kernel(ctx_ref, aug_ref, out_ref, *, inv_temp):
    tb, d = ctx_ref.shape          # rows handled by this grid step
    b = aug_ref.shape[0]           # full batch (positives + in-batch negatives)
    row_off = pl.multiple_of(pl.program_id(0) * tb, tb)

    c = ctx_ref[...].astype(jnp.float32)          # [tb, d]
    a = aug_ref[...].astype(jnp.float32)          # [b,  d]

    # F.normalize(x, p=2, dim=1): x / max(||x||, 1e-12) == x * rsqrt(max(||x||^2, 1e-24))
    c_inv = jax.lax.rsqrt(jnp.maximum(jnp.sum(c * c, axis=1, keepdims=True), 1e-24))
    a_inv = jax.lax.rsqrt(jnp.maximum(jnp.sum(a * a, axis=1, keepdims=True), 1e-24))
    # Fold 1/temperature into the (normalized) LHS: O(tb*d) instead of O(tb*b).
    c_n = (c * c_inv) * inv_temp                  # [tb, d]
    a_n = a * a_inv                               # [b,  d]

    # Positive-pair logits in full f32 (row-wise dot, O(tb*d)) for this block.
    a_blk = aug_ref[pl.ds(row_off, tb), :].astype(jnp.float32)
    a_blk_inv = jax.lax.rsqrt(
        jnp.maximum(jnp.sum(a_blk * a_blk, axis=1, keepdims=True), 1e-24))
    diag = jnp.sum(c_n * (a_blk * a_blk_inv), axis=1, keepdims=True)   # [tb, 1]

    # bf16 MXU matmul with f32 accumulation: [tb, d] x [d, b] -> [tb, b].
    sim = jax.lax.dot_general(
        c_n.astype(jnp.bfloat16), a_n.astype(jnp.bfloat16),
        dimension_numbers=(((1,), (1,)), ((), ())),
        preferred_element_type=jnp.float32)

    # Substitute the exact f32 positive logits on the diagonal (one select).
    # logsumexp is dominated by the positive term; this keeps (lse - diag)
    # free of bf16 rounding of that dominant entry.
    rows = jax.lax.broadcasted_iota(jnp.int32, (tb, b), 0) + row_off
    cols = jax.lax.broadcasted_iota(jnp.int32, (tb, b), 1)
    sim = jnp.where(rows == cols, diag, sim)

    # cross_entropy(sim, arange(b)) restricted to this row block:
    #   sum_i ( logsumexp_j(sim[i, j]) - sim[i, i] )
    m = jnp.max(sim, axis=1, keepdims=True)
    lse = m + jnp.log(jnp.sum(jnp.exp(sim - m), axis=1, keepdims=True))
    total = jnp.sum(lse - diag)                   # scalar partial for this block

    out_ref[...] = jnp.broadcast_to(total, out_ref.shape).astype(out_ref.dtype)


# -------------------------------- wrapper ----------------------------------

def _pick_row_block(batch):
    # Small batches: one grid step (single MXU matmul, zero pipeline overhead).
    # Large batches: split rows so v7x's 2 TensorCores both work and the
    # per-step [row_block, batch] similarity tile stays well inside VMEM.
    if batch <= 256:
        return batch
    for tb in (256, 128, 64, 32, 16, 8):
        if batch % tb == 0:
            return tb
    return batch   # odd batch size: fall back to a single step
    # TODO(synk): for B beyond VMEM (e.g. B>=8K on v7x) add flash-style online
    # logsumexp over column blocks as well.


@functools.partial(jax.jit, static_argnames=("temperature", "row_block"))
def _infonce_pallas(context_embeddings, augmented_embeddings, temperature=0.1,
                    row_block=None):
    b, d = context_embeddings.shape
    tb = _pick_row_block(b) if row_block is None else int(row_block)
    assert b % tb == 0 and (tb == b or tb % 8 == 0), (b, tb)
    g = b // tb

    kern = functools.partial(_infonce_kernel, inv_temp=float(1.0 / temperature))

    # two inputs (double-buffered) + sim/exp temporaries + headroom, capped at
    # the smallest physical VMEM across v5e/v6e/v7x (64 MiB on v7x).
    bytes_in = context_embeddings.dtype.itemsize + augmented_embeddings.dtype.itemsize
    vmem_need = b * d * bytes_in * 2 + 4 * tb * b * 4 + (2 << 20)
    vmem_limit = int(min(max(vmem_need, 32 << 20), 64 << 20))

    partials = pl.pallas_call(
        kern,
        out_shape=jax.ShapeDtypeStruct((g, 8, 128), jnp.float32),
        grid=(g,),
        in_specs=[pl.BlockSpec((tb, d), lambda i: (i, 0)),
                  pl.BlockSpec((b, d), lambda i: (0, 0))],
        out_specs=pl.BlockSpec((1, 8, 128), lambda i: (i, 0, 0)),
        compiler_params=pltpu.CompilerParams(
            dimension_semantics=("parallel",),
            vmem_limit_bytes=vmem_limit),
    )(context_embeddings, augmented_embeddings)

    # Tiny wrapper-side reduction of the per-block partial sums.
    return jnp.sum(partials[:, 0, 0]) * (1.0 / b)


def infonce_loss(context_embeddings, augmented_embeddings=None,
                 temperature=0.1, negative_sampling="batch", noise_key=None,
                 row_block=None):
    """Matches InfoNCELoss(temperature, negative_sampling).forward(...).

    Note: `temperature` is a static arg, so each distinct value recompiles.
    """
    del negative_sampling  # unused by the reference forward as well
    if augmented_embeddings is None:
        # TODO(synk): torch.randn_like's RNG stream cannot be reproduced; the
        # noise-augmentation branch uses JAX's PRNG (same distribution).
        if noise_key is None:
            noise_key = jax.random.PRNGKey(0)
        augmented_embeddings = context_embeddings + 0.1 * jax.random.normal(
            noise_key, context_embeddings.shape, context_embeddings.dtype)
    return _infonce_pallas(context_embeddings, augmented_embeddings,
                           temperature=float(temperature), row_block=row_block)


# ----------------------------- pure-JAX reference ---------------------------

def reference(ctx, aug, temperature=0.1):
    c_n = ctx / jnp.maximum(jnp.linalg.norm(ctx, axis=1, keepdims=True), 1e-12)
    a_n = aug / jnp.maximum(jnp.linalg.norm(aug, axis=1, keepdims=True), 1e-12)
    sim = jnp.dot(c_n, a_n.T, precision=jax.lax.Precision.HIGHEST) / temperature
    lse = jax.scipy.special.logsumexp(sim, axis=1)
    diag = jnp.diagonal(sim)
    return jnp.mean(lse - diag)


# ----------------------------------- main -----------------------------------

if __name__ == "__main__":
    # Tolerance note: the kernel uses a bf16 MXU matmul (f32 accumulate) for the
    # off-diagonal (negative) logits, per the perf review; the positive logits
    # stay f32.  2e-3 comfortably covers the bf16 rounding of the negatives.
    TOL = dict(atol=2e-3, rtol=2e-3)

    # 1) tiny shape implied by the forward: [batch_size, d_model]
    k1, k2 = jax.random.split(jax.random.PRNGKey(0))
    B, D = 2, 32
    ctx = jax.random.normal(k1, (B, D), dtype=jnp.float32)
    aug = ctx + 0.1 * jax.random.normal(k2, (B, D), dtype=jnp.float32)
    loss = infonce_loss(ctx, aug, temperature=0.1)
    jax.block_until_ready(loss)
    assert loss.shape == (), loss.shape
    ref = reference(ctx, aug, 0.1)
    assert jnp.allclose(loss, ref, **TOL), (float(loss), float(ref))

    # 2) lane-dense single-step case
    B2, D2 = 16, 128
    ctx2 = jax.random.normal(jax.random.PRNGKey(1), (B2, D2), dtype=jnp.float32)
    aug2 = ctx2 + 0.1 * jax.random.normal(jax.random.PRNGKey(2), (B2, D2),
                                          dtype=jnp.float32)
    loss2 = infonce_loss(ctx2, aug2, temperature=0.1)
    jax.block_until_ready(loss2)
    ref2 = reference(ctx2, aug2, 0.1)
    assert jnp.allclose(loss2, ref2, **TOL), (float(loss2), float(ref2))

    # 3) exercise the multi-block "parallel" row grid at a small size
    B3, D3 = 32, 128
    ctx3 = jax.random.normal(jax.random.PRNGKey(3), (B3, D3), dtype=jnp.float32)
    aug3 = ctx3 + 0.1 * jax.random.normal(jax.random.PRNGKey(4), (B3, D3),
                                          dtype=jnp.float32)
    loss3 = infonce_loss(ctx3, aug3, temperature=0.1, row_block=8)  # grid=(4,)
    jax.block_until_ready(loss3)
    ref3 = reference(ctx3, aug3, 0.1)
    assert jnp.allclose(loss3, ref3, **TOL), (float(loss3), float(ref3))

    print("KERNEL_OK")
</pallas_src>

<mosaic_0001>
module attributes {stable_mosaic.version = 11 : i64} {
  func.func @_infonce_kernel(%arg0: i32, %arg1: memref<2x32xf32, #tpu.memory_space<vmem>>, %arg2: memref<2x32xf32, #tpu.memory_space<vmem>>, %arg3: memref<1x8x128xf32, #tpu.memory_space<vmem>>) attributes {dimension_semantics = [#tpu.dimension_semantics<parallel>], iteration_bounds = array<i64: 1>, scalar_prefetch = 0 : i64, scratch_operands = 0 : i64, tpu.core_type = #tpu.core_type<tc>, window_params = [{transform_indices = @transform_0, window_bounds = array<i64: 2, 32>}, {pipeline_mode = #tpu.pipeline_mode<synchronous>, transform_indices = @transform_1, window_bounds = array<i64: 2, 32>}, {transform_indices = @transform_2, window_bounds = array<i64: 1, 8, 128>}]} {
    %c2_i32 = arith.constant 2 : i32
    %0 = arith.muli %arg0, %c2_i32 : i32
    %1 = tpu.assume_multiple %0, 2 : i32
    %c0 = arith.constant 0 : index
    %c0_0 = arith.constant 0 : index
    %2 = vector.load %arg1[%c0, %c0_0] : memref<2x32xf32, #tpu.memory_space<vmem>>, vector<2x32xf32>
    %c0_1 = arith.constant 0 : index
    %c0_2 = arith.constant 0 : index
    %3 = vector.load %arg2[%c0_1, %c0_2] : memref<2x32xf32, #tpu.memory_space<vmem>>, vector<2x32xf32>
    %4 = arith.mulf %2, %2 : vector<2x32xf32>
    %cst = arith.constant dense<0.000000e+00> : vector<2xf32>
    %5 = vector.multi_reduction <add>, %4, %cst [1] : vector<2x32xf32> to vector<2xf32>
    %6 = vector.shape_cast %5 : vector<2xf32> to vector<2x1xf32>
    %cst_3 = arith.constant 1.000000e-24 : f32
    %7 = vector.broadcast %cst_3 : f32 to vector<2x1xf32>
    %8 = arith.maximumf %6, %7 : vector<2x1xf32>
    %9 = math.rsqrt %8 : vector<2x1xf32>
    %10 = arith.mulf %3, %3 : vector<2x32xf32>
    %cst_4 = arith.constant dense<0.000000e+00> : vector<2xf32>
    %11 = vector.multi_reduction <add>, %10, %cst_4 [1] : vector<2x32xf32> to vector<2xf32>
    %12 = vector.shape_cast %11 : vector<2xf32> to vector<2x1xf32>
    %cst_5 = arith.constant 1.000000e-24 : f32
    %13 = vector.broadcast %cst_5 : f32 to vector<2x1xf32>
    %14 = arith.maximumf %12, %13 : vector<2x1xf32>
    %15 = math.rsqrt %14 : vector<2x1xf32>
    %16 = vector.broadcast %9 : vector<2x1xf32> to vector<2x32xf32>
    %17 = arith.mulf %2, %16 : vector<2x32xf32>
    %cst_6 = arith.constant 1.000000e+01 : f32
    %18 = vector.broadcast %cst_6 : f32 to vector<2x32xf32>
    %19 = arith.mulf %17, %18 : vector<2x32xf32>
    %20 = vector.broadcast %15 : vector<2x1xf32> to vector<2x32xf32>
    %21 = arith.mulf %3, %20 : vector<2x32xf32>
    %22 = arith.index_cast %1 : i32 to index
    %c0_7 = arith.constant 0 : index
    %23 = vector.load %arg2[%22, %c0_7] : memref<2x32xf32, #tpu.memory_space<vmem>>, vector<2x32xf32>
    %24 = arith.mulf %23, %23 : vector<2x32xf32>
    %cst_8 = arith.constant dense<0.000000e+00> : vector<2xf32>
    %25 = vector.multi_reduction <add>, %24, %cst_8 [1] : vector<2x32xf32> to vector<2xf32>
    %26 = vector.shape_cast %25 : vector<2xf32> to vector<2x1xf32>
    %cst_9 = arith.constant 1.000000e-24 : f32
    %27 = vector.broadcast %cst_9 : f32 to vector<2x1xf32>
    %28 = arith.maximumf %26, %27 : vector<2x1xf32>
    %29 = math.rsqrt %28 : vector<2x1xf32>
    %30 = vector.broadcast %29 : vector<2x1xf32> to vector<2x32xf32>
    %31 = arith.mulf %23, %30 : vector<2x32xf32>
    %32 = arith.mulf %19, %31 : vector<2x32xf32>
    %cst_10 = arith.constant dense<0.000000e+00> : vector<2xf32>
    %33 = vector.multi_reduction <add>, %32, %cst_10 [1] : vector<2x32xf32> to vector<2xf32>
    %34 = vector.shape_cast %33 : vector<2xf32> to vector<2x1xf32>
    %35 = arith.truncf %19 : vector<2x32xf32> to vector<2x32xbf16>
    %36 = arith.truncf %21 : vector<2x32xf32> to vector<2x32xbf16>
    %cst_11 = arith.constant dense<0.000000e+00> : vector<2x2xf32>
    %37 = tpu.matmul %35, %36, %cst_11 {dimension_numbers = #tpu.dot_dimension_numbers<[1], [1], [0], [0], [0, 0, 1, 0], [], []>} : vector<2x32xbf16>, vector<2x32xbf16>, vector<2x2xf32> -> vector<2x2xf32>
    %38 = tpu.iota {dimensions = array<i32: 0>} : vector<2x2xi32>
    %39 = vector.broadcast %1 : i32 to vector<2x2xi32>
    %40 = arith.addi %38, %39 : vector<2x2xi32>
    %41 = tpu.iota {dimensions = array<i32: 1>} : vector<2x2xi32>
    %42 = arith.cmpi eq, %40, %41 : vector<2x2xi32>
    %43 = vector.shape_cast %34 : vector<2x1xf32> to vector<2x1xf32>
    %44 = vector.broadcast %43 : vector<2x1xf32> to vector<2x2xf32>
    %45 = arith.select %42, %44, %37 : vector<2x2xi1>, vector<2x2xf32>
    %cst_12 = arith.constant dense<0xFF800000> : vector<2xf32>
    %46 = vector.multi_reduction <maximumf>, %45, %cst_12 [1] : vector<2x2xf32> to vector<2xf32>
    %47 = vector.shape_cast %46 : vector<2xf32> to vector<2x1xf32>
    %48 = vector.broadcast %47 : vector<2x1xf32> to vector<2x2xf32>
    %49 = arith.subf %45, %48 : vector<2x2xf32>
    %50 = math.exp %49 : vector<2x2xf32>
    %cst_13 = arith.constant dense<0.000000e+00> : vector<2xf32>
    %51 = vector.multi_reduction <add>, %50, %cst_13 [1] : vector<2x2xf32> to vector<2xf32>
    %52 = vector.shape_cast %51 : vector<2xf32> to vector<2x1xf32>
    %53 = math.log %52 : vector<2x1xf32>
    %54 = arith.addf %47, %53 : vector<2x1xf32>
    %55 = arith.subf %54, %34 : vector<2x1xf32>
    %56 = vector.shape_cast %55 : vector<2x1xf32> to vector<1x2x1xf32>
    %cst_14 = arith.constant dense<0.000000e+00> : vector<1xf32>
    %57 = vector.multi_reduction <add>, %56, %cst_14 [1, 2] : vector<1x2x1xf32> to vector<1xf32>
    %58 = vector.shape_cast %57 : vector<1xf32> to vector<1x1x1xf32>
    %59 = vector.extract %58[0, 0, 0] : f32 from vector<1x1x1xf32>
    %60 = vector.broadcast %59 : f32 to vector<1x8x128xf32>
    %c0_15 = arith.constant 0 : index
    %c0_16 = arith.constant 0 : index
    %c0_17 = arith.constant 0 : index
    %61 = vector.load %arg3[%c0_15, %c0_16, %c0_17] : memref<1x8x128xf32, #tpu.memory_space<vmem>>, vector<1x8x128xf32>
    tpu.vector_store %arg3[%c0_15, %c0_16, %c0_17], %60 {strides = array<i32>} : memref<1x8x128xf32, #tpu.memory_space<vmem>>, vector<1x8x128xf32>,
    return
  }
  func.func @transform_0(%arg0: i32) -> (i32, i32) {
    %c0_i32 = arith.constant 0 : i32
    %c0_i32_0 = arith.constant 0 : i32
    return %arg0, %c0_i32 : i32, i32
  }
  func.func @transform_1(%arg0: i32) -> (i32, i32) {
    %c0_i32 = arith.constant 0 : i32
    %c0_i32_0 = arith.constant 0 : i32
    %c0_i32_1 = arith.constant 0 : i32
    return %c0_i32, %c0_i32_0 : i32, i32
  }
  func.func @transform_2(%arg0: i32) -> (i32, i32, i32) {
    %c0_i32 = arith.constant 0 : i32
    %c0_i32_0 = arith.constant 0 : i32
    %c0_i32_1 = arith.constant 0 : i32
    return %arg0, %c0_i32, %c0_i32_0 : i32, i32, i32
  }
}

</mosaic_0001>

<bundles_post_ra>
// kernel: _infonce_pallas.1
= control target key start
LH: loop header
LB: loop body
LE: loop exit
PB: predicated region body
PF: predicated region fallthrough
CT: control target
= control target key end

     0   :  { %7 = vsyncpa [#allocation3], 0  ;;  %s193_s9 = smov [#allocation2]   ;;  %s236_s0 = inlined_call_operand.hbm [shape: f32[2,32], index: 0, kind: input, shape index: {}]   ;;  %s237_s1 = inlined_call_operand.vmem [shape: f32[2,32], index: 1, kind: input, shape index: {}]   ;;  %s238_s2 = inlined_call_operand.vmem [shape: f32[1,8,128], index: 2, kind: output, shape index: {}]  }
   0x1   :  { %s14_s10 = sshll.u32 %s193_s9, 4  ;;  %s169_s13 = scalar_lea.hbm %s236_s0, 32  ;;  %s15_s10 = int_to_ptr.vmem [resolvable:$true] %s14_s10 }
   0x2   :  { %p170_p0 = scmp.ne.s32.totalorder %s236_s0, %s169_s13  ;;  %p173_p1 = scmp.lt.u32.totalorder %s169_s13, %s236_s0 }
   0x4   :  { %p175_p2 = pnand %p173_p1, %p170_p0 }
   0x6   :  { %178 = shalt.err (!%p175_p2)
}
   0x7   :  { %s179_s18 = scalar_lea.vmem %s15_s10, 32  ;;  %p184_p4 = scmp.lt.s32.totalorder %s15_s10, %s15_s10 }
   0x8   :  { %p180_p3 = scmp.ne.s32.totalorder %s15_s10, %s179_s18  ;;  %p185_p5 = scmp.lt.s32.totalorder %s179_s18, %s179_s18 }
   0xa   :  { %p186_p6 = por %p185_p5, %p184_p4 }
   0xc   :  { %p187_p7 = pnand %p186_p6, %p180_p3 }
   0xe   :  { %190 = shalt.err (!%p187_p7)
}
   0xf   :  { %17 = dma.hbm_to_vmem [thread:$0]  %s236_s0, 32, %s15_s10, [#allocation3]  }
  0x10   :  { %191 = dma.done.wait [#allocation3], 32  }
  0x11   :  { %192 = vsyncadd [#allocation3], 4294967264  ;;  %vm28_vm0 = vcmask 254976   ;;  %v26_v0 = vld [vmem:[%s237_s1] sm:$0x3]  ;;  %v194_v9 = vmov 0.0   ;;  %v105_v28 = vlaneseq }
  0x12   :  { %v25_v1 = vld [vmem:[#allocation2] sm:$0x3]  ;;  %v34_v3 = vmul.f32 %v26_v0, %v26_v0  ;;  %148 = vmatprep.subr.bf16.mxu0 %v194_v9  ;;  %vm195_vm1 = vmmov 0   ;;  %vm58_vm2 = vcmask 261120   ;;  %vm113_vm4 = vcmask 9216  }
  0x13   :  { %v44_v2 = vld [vmem:[%s237_s1] sm:$0x3]  ;;  %v27_v4 = vmul.f32 %v25_v1, %v25_v1  ;;  %150 = vmatprep.mubr.msk.bf16.mxu0 %vm195_vm1, %v194_v9  ;;  %v106_v29 = vshrl.u32 %v105_v28, 7  ;;  %v110_v30 = vand.u32 127, %v105_v28  ;;  %vm127_vm5 = vcmask 1024  }
  0x14   :  { %v45_v5 = vmul.f32 %v44_v2, %v44_v2  ;;  %v35_v6 = vsel %vm28_vm0, %v34_v3, 0.0 }
  0x15   :  { %36 = vadd.xlane.f32.xlu0 %v35_v6  ;;  %v29_v8 = vsel %vm28_vm0, %v27_v4, 0.0  ;;  %vm111_vm3 = vcmp.eq.s32.totalorder %v106_v29, %v110_v30 }
  0x16   :  { %v46_v7 = vsel %vm28_vm0, %v45_v5, 0.0 }
  0x17   :  { %47 = vadd.xlane.f32.xlu1 %v46_v7 }
  0x19   :  { %30 = vadd.xlane.f32.xlu0 %v29_v8 }
  0xa2   :  { %v37_v10 = vpop.xlane.xlu0 %36 }
  0xa3   :  { %v38_v12 = vmax.f32 %v37_v10, 1e-24 }
  0xa4   :  { %v48_v11 = vpop.xlane.xlu1 %47 }
  0xa5   :  { %v49_v13 = vmax.f32 %v48_v11, 1e-24  ;;  %159 = vrsqrt.f32 %v38_v12 }
  0xa6   :  { %v31_v14 = vpop.xlane.xlu0 %30 }
  0xa7   :  { %v32_v15 = vmax.f32 %v31_v14, 1e-24  ;;  %161 = vrsqrt.f32 %v49_v13 }
  0xa9   :  { %163 = vrsqrt.f32 %v32_v15 }
  0xaf   :  { %v160_v16 = vpop.eup %159 }
  0xb0   :  { %v42_v17 = vmul.f32 %v160_v16, %v26_v0 }
  0xb1   :  { %v162_v18 = vpop.eup %161 }
  0xb2   :  { %v57_v19 = vpack.c.bf16 %v42_v17, %v42_v17  ;;  %v51_v23 = vmul.f32 %v162_v18, %v44_v2 }
  0xb3   :  { %v164_v20 = vpop.eup %163 }
  0xb4   :  { %v63_v21 = vsel %vm58_vm2, %v57_v19, 0  ;;  %v40_v22 = vmul.f32 %v164_v20, %v25_v1 }
  0xb5   :  { %149 = vmatpush3.bf16.xpose.msra.mxu0 %v63_v21 }
  0xb6   :  { %v41_v24 = vmul.f32 10.0, %v40_v22 }
  0xb8   :  { %v56_v25 = vpack.c.bf16 %v41_v24, %v41_v24  ;;  %v52_v26 = vmul.f32 %v51_v23, %v41_v24 }
  0xba   :  { %v53_v27 = vsel %vm28_vm0, %v52_v26, 0.0 }
  0xbb   :  { %54 = vadd.xlane.f32.xlu1 %v53_v27 }
  0xbc   :  { %151 = vmatmul.mubr.msk.bf16.vlgmr.msra.gmra.mrb[0].mxu0 %vm58_vm2, %v56_v25 }
 0x148   :  { %v55_v31 = vpop.xlane.xlu1 %54 }
 0x18f   :  { %v99_v32 = vpop.f32.mrb[0].mxu0 }
 0x190   :  { %v152_v33 = vpop.f32.mrb[1].mxu0  ;;  %v112_v34 = vsel %vm111_vm3, %v55_v31, %v99_v32 }
 0x191   :  { %v102_v35 = vpop.f32.mrb[2].mxu0  ;;  %v114_v36 = vsel %vm113_vm4, %v112_v34, -inf }
 0x192   :  { %v153_v37 = vpop.f32.mrb[3].mxu0  ;;  %115 = vmax.xlane.f32.xlu0 %v114_v36 }
 0x21f   :  { %v116_v38 = vpop.xlane.xlu0 %115 }
 0x220   :  { %v117_v39 = vsub.f32 %v112_v34, %v116_v38 }
 0x222   :  { %v118_v40 = vmul.f32 1.442695, %v117_v39 }
 0x224   :  { %165 = vpow2.f32 %v118_v40 }
 0x22e   :  { %v166_v41 = vpop.eup %165 }
 0x22f   :  { %v120_v42 = vsel %vm113_vm4, %v166_v41, 0.0 }
 0x230   :  { %121 = vadd.xlane.f32.xlu1 %v120_v42 }
 0x2bd   :  { %v122_v43 = vpop.xlane.xlu1 %121 }
 0x2be   :  { %167 = vlog2.f32 %v122_v43 }
 0x2c8   :  { %v168_v44 = vpop.eup %167 }
 0x2c9   :  { %v124_v45 = vmul.f32 0.6931472, %v168_v44 }
 0x2cb   :  { %v125_v46 = vadd.f32 %v124_v45, %v116_v38 }
 0x2cd   :  { %v126_v47 = vsub.f32 %v125_v46, %v55_v31 }
 0x2cf   :  { %v128_v48 = vsel %vm127_vm5, %v126_v47, 0.0 }
 0x2d0   :  { %129 = vadd.xlane.f32.xlu0 %v128_v48 }
 0x35d   :  { %v130_v49 = vpop.xlane.xlu0 %129 }
 0x35e   :  { %v131_v50 = vrot.slane %v130_v49, 4 }
 0x360   :  { %v132_v51 = vadd.f32 %v131_v50, %v130_v49 }
 0x362   :  { %v133_v52 = vrot.slane %v132_v51, 2 }
 0x364   :  { %v134_v53 = vadd.f32 %v133_v52, %v132_v51 }
 0x366   :  { %v135_v54 = vrot.slane %v134_v53, 1 }
 0x368   :  { %v136_v55 = vadd.f32 %v135_v54, %v134_v53 }
 0x36a   :  { %154 = vpush %v136_v55 }
 0x39b   :  { %s155_s0 = spop %154 }
 0x39c   :  { %v138_v56 = vstv %s155_s0 }
 0x39d   :  { %139 = vst [vmem:[%s238_s2] sm:$0xff] %v138_v56 }
 0x39e   :  { %144 = vsyncpa [#allocation3], 1 }

</bundles_post_ra>
